<compile_context>
chip_gen: v5e
topology: v5e:2x2
jax: 0.10.0
libtpu: 0.0.40
codegen_flags: <defaults>
</compile_context>

<pallas_src>
import functools

import jax
import jax.numpy as jnp
from jax.experimental import pallas as pl
from jax.experimental.pallas import tpu as pltpu

EPS = 1e-5
LANE = 128          # feature (lane) granularity
MIN_FOUT_PAD = 256  # >= 2 feature tiles so the grid can shard across 2 TCs (v7x)
BATCH_PAD = 16      # bf16 sublane packing


def _round_up(v: int, m: int) -> int:
    return ((v + m - 1) // m) * m


@functools.lru_cache(maxsize=None)
def _vmem_budget_bytes() -> int:
    """~80% of physical VMEM: headroom for compiler scratch / double buffers."""
    try:
        cap = int(pltpu.get_tpu_info().vmem_capacity_bytes)
    except Exception:
        cap = 64 * 1024 * 1024  # conservative (v7x-sized) fallback
    return int(cap * 0.8)


def _layer_vmem_bytes(n_pad: int, fin: int, tf: int, x_bytes: int, out_bytes: int) -> int:
    """Conservative per-step VMEM estimate (every stream counted x2)."""
    x_buf = 2 * n_pad * fin * x_bytes     # resident activations (conservative x2)
    w_buf = 2 * fin * tf * 2              # bf16 weight tile stream
    gb_buf = 2 * 2 * tf * 4               # packed gamma/beta tile
    o_buf = 2 * n_pad * tf * out_bytes    # output tile stream
    y_tmp = 2 * n_pad * tf * 4            # f32 matmul result + affine temporaries
    return x_buf + w_buf + gb_buf + o_buf + y_tmp


def _choose_tile_f(n_pad: int, fin: int, fout_pad: int, x_bytes: int, out_bytes: int) -> int:
    """Largest 128-multiple Fout tile that divides fout_pad, leaves >= 2 grid
    steps (megacore sharding on v7x), and fits the per-generation VMEM budget
    (so it naturally grows on v5e/v6e's 128 MiB and shrinks on v7x's 64 MiB)."""
    budget = _vmem_budget_bytes()
    cap = (fout_pad // 2 // LANE) * LANE   # keep at least 2 grid steps
    for t in range(cap, LANE - 1, -LANE):
        if fout_pad % t == 0 and _layer_vmem_bytes(n_pad, fin, t, x_bytes, out_bytes) <= budget:
            return t
    return LANE  # TODO(synk): batch-tiled two-pass fallback if even 128 overflows


def _layer_kernel(x_ref, w_ref, gb_ref, o_ref, *, relu: bool, n_real: int, n_pad: int):
    """Linear (no bias) + training-mode BatchNorm1d (+ ReLU) on one Fout tile.

    x_ref : [Npad, Fin]  f32 or bf16 (full padded batch, resident)
    w_ref : [Fin, TF]    bf16        (pre-transposed weight tile)
    gb_ref: [2, TF]      f32         (row 0 = gamma, row 1 = beta)
    o_ref : [Npad, TF]
    """
    x = x_ref[...].astype(jnp.bfloat16)   # in-kernel cast, hidden under the MXU
    y = jnp.dot(x, w_ref[...], preferred_element_type=jnp.float32)

    # Batch stats over the *real* rows. Padded x rows are zero and the bias is
    # dropped, so padded rows of y are exactly zero -> the sums are exact.
    n_inv = 1.0 / n_real
    mean = jnp.sum(y, axis=0, keepdims=True) * n_inv
    mean_sq = jnp.sum(y * y, axis=0, keepdims=True) * n_inv
    var = jnp.maximum(mean_sq - mean * mean, 0.0)   # clamp f32 cancellation

    gamma = gb_ref[0:1, :]
    beta = gb_ref[1:2, :]
    s = gamma * jax.lax.rsqrt(var + EPS)            # rsqrt -> EUP slot
    t = beta - mean * s
    out = y * s + t                                  # fused affine: 2 VPU ops/elem
    if relu:
        out = jnp.maximum(out, 0.0)
    if n_pad > n_real:
        rows = jax.lax.broadcasted_iota(jnp.int32, (n_pad, 1), 0)
        out = jnp.where(rows < n_real, out, 0.0)     # keep padded rows exactly 0
    o_ref[...] = out.astype(o_ref.dtype)


def _layer(x, w_t, gb, *, relu: bool, out_dtype, n_real: int):
    """x:[Npad,Fin], w_t:[Fin,FoutPad] bf16, gb:[2,FoutPad] f32 -> [Npad,FoutPad]."""
    n_pad, fin = x.shape
    assert w_t.shape[0] == fin, (w_t.shape, fin)
    fout_pad = w_t.shape[1]
    tf = _choose_tile_f(n_pad, fin, fout_pad,
                        x.dtype.itemsize, jnp.dtype(out_dtype).itemsize)
    grid = (fout_pad // tf,)

    kernel = functools.partial(_layer_kernel, relu=relu, n_real=n_real, n_pad=n_pad)
    return pl.pallas_call(
        kernel,
        out_shape=jax.ShapeDtypeStruct((n_pad, fout_pad), out_dtype),
        grid=grid,
        in_specs=[
            # Activations: grid-invariant index map -> fetched once, resident.
            pl.BlockSpec((n_pad, fin), lambda j: (0, 0)),
            pl.BlockSpec((fin, tf), lambda j: (0, j)),   # weight tile streamed
            pl.BlockSpec((2, tf), lambda j: (0, j)),     # packed gamma/beta tile
        ],
        out_specs=pl.BlockSpec((n_pad, tf), lambda j: (0, j)),
        compiler_params=pltpu.CompilerParams(
            dimension_semantics=("parallel",),           # megacore sharding on v7x
            vmem_limit_bytes=_vmem_budget_bytes(),       # ~80% of physical VMEM
        ),
    )(x, w_t, gb)


def prepare_params(p):
    """PyTorch-layout params -> kernel layout: pre-transposed bf16 weights and
    packed f32 gamma/beta rows, zero-padded so every Fout is a multiple of 128
    (and >= 256). Linear biases are dropped: they cancel exactly inside BN."""

    def pack(w, g, be, fin_pad):
        fout, fin = w.shape
        fout_pad = max(MIN_FOUT_PAD, _round_up(fout, LANE))
        w_t = jnp.zeros((fin_pad, fout_pad), jnp.bfloat16)
        w_t = w_t.at[:fin, :fout].set(jnp.asarray(w, jnp.float32).T.astype(jnp.bfloat16))
        gb = jnp.zeros((2, fout_pad), jnp.float32)
        gb = gb.at[0, :fout].set(jnp.reshape(g, (-1,)).astype(jnp.float32))
        gb = gb.at[1, :fout].set(jnp.reshape(be, (-1,)).astype(jnp.float32))
        return w_t, gb, fout_pad

    in_dim = int(p["w1"].shape[1])
    w1t, gb1, mid_pad1 = pack(p["w1"], p["g1"], p["be1"], fin_pad=in_dim)
    w2t, gb2, mid_pad2 = pack(p["w2"], p["g2"], p["be2"], fin_pad=mid_pad1)
    w3t, gb3, _ = pack(p["w3"], p["g3"], p["be3"], fin_pad=mid_pad2)
    return dict(w1t=w1t, gb1=gb1, w2t=w2t, gb2=gb2, w3t=w3t, gb3=gb3,
                out_dim=int(p["w3"].shape[0]))


def projection_mlp(x, kernel_params):
    """x: [N, in_dim] float32 -> [N, out_dim] float32 (training-mode BN)."""
    n = x.shape[0]
    n_pad = _round_up(n, BATCH_PAD)
    if n_pad != n:
        x = jnp.pad(x, ((0, n_pad - n), (0, 0)))   # zero rows: exact with dropped bias
    # x stays f32 here; the bf16 cast happens inside the layer-1 kernel.
    h = _layer(x, kernel_params["w1t"], kernel_params["gb1"],
               relu=True, out_dtype=jnp.bfloat16, n_real=n)
    h = _layer(h, kernel_params["w2t"], kernel_params["gb2"],
               relu=True, out_dtype=jnp.bfloat16, n_real=n)
    y = _layer(h, kernel_params["w3t"], kernel_params["gb3"],
               relu=False, out_dtype=jnp.float32, n_real=n)
    return y[:n, :kernel_params["out_dim"]]        # strip batch / feature padding


def init_params(key, in_dim, mid_dim, out_dim):
    """Deterministic synthetic parameters with PyTorch-like shapes/scales."""
    ks = jax.random.split(key, 12)

    def lin(kw, kb, fan_in, fan_out):
        bound = 1.0 / jnp.sqrt(fan_in)
        w = jax.random.uniform(kw, (fan_out, fan_in), jnp.float32, -bound, bound)
        b = jax.random.uniform(kb, (1, fan_out), jnp.float32, -bound, bound)
        return w, b

    w1, b1 = lin(ks[0], ks[1], in_dim, mid_dim)
    w2, b2 = lin(ks[2], ks[3], mid_dim, mid_dim)
    w3, b3 = lin(ks[4], ks[5], mid_dim, out_dim)

    g1 = 1.0 + 0.1 * jax.random.normal(ks[6], (1, mid_dim), jnp.float32)
    be1 = 0.1 * jax.random.normal(ks[7], (1, mid_dim), jnp.float32)
    g2 = 1.0 + 0.1 * jax.random.normal(ks[8], (1, mid_dim), jnp.float32)
    be2 = 0.1 * jax.random.normal(ks[9], (1, mid_dim), jnp.float32)
    g3 = 1.0 + 0.1 * jax.random.normal(ks[10], (1, out_dim), jnp.float32)
    be3 = 0.1 * jax.random.normal(ks[11], (1, out_dim), jnp.float32)

    return dict(
        w1=w1, b1=b1, g1=g1, be1=be1,
        w2=w2, b2=b2, g2=g2, be2=be2,
        w3=w3, b3=b3, g3=g3, be3=be3,
    )


def projection_mlp_ref(x, p):
    """Pure-JAX f32 reference matching the PyTorch forward (training-mode BN,
    bias included -- the kernel drops it because it cancels in BN)."""
    def layer(x, w, b, g, be, relu):
        y = x @ w.T + b
        mean = jnp.mean(y, axis=0, keepdims=True)
        var = jnp.mean((y - mean) ** 2, axis=0, keepdims=True)
        out = (y - mean) / jnp.sqrt(var + EPS) * g + be
        return jnp.maximum(out, 0.0) if relu else out

    h = layer(x, p["w1"], p["b1"], p["g1"], p["be1"], True)
    h = layer(h, p["w2"], p["b2"], p["g2"], p["be2"], True)
    h = layer(h, p["w3"], p["b3"], p["g3"], p["be3"], False)
    return h


if __name__ == "__main__":
    key = jax.random.PRNGKey(0)
    k_x, k_p = jax.random.split(key)

    batch, in_dim, mid_dim, out_dim = 8, 32, 32, 16
    x = jax.random.normal(k_x, (batch, in_dim), jnp.float32)
    params = init_params(k_p, in_dim, mid_dim, out_dim)
    kparams = prepare_params(params)

    out = projection_mlp(x, kparams)
    out = jax.block_until_ready(out)

    ref = projection_mlp_ref(x, params)
    assert out.shape == (batch, out_dim)
    # bf16 MXU inputs => loosened tolerance vs the f32 reference.
    assert jnp.allclose(out, ref, atol=8e-2, rtol=8e-2), "mismatch vs reference"

    print("KERNEL_OK")
</pallas_src>

<mosaic_0001>
module attributes {stable_mosaic.version = 11 : i64} {
  func.func @_layer_kernel(%arg0: i32, %arg1: memref<16x32xf32, #tpu.memory_space<vmem>>, %arg2: memref<32x128xbf16, #tpu.memory_space<vmem>>, %arg3: memref<2x128xf32, #tpu.memory_space<vmem>>, %arg4: memref<16x128xbf16, #tpu.memory_space<vmem>>) attributes {dimension_semantics = [#tpu.dimension_semantics<parallel>], iteration_bounds = array<i64: 2>, scalar_prefetch = 0 : i64, scratch_operands = 0 : i64, tpu.core_type = #tpu.core_type<tc>, window_params = [{pipeline_mode = #tpu.pipeline_mode<synchronous>, transform_indices = @transform_0, window_bounds = array<i64: 16, 32>}, {transform_indices = @transform_1, window_bounds = array<i64: 32, 128>}, {transform_indices = @transform_2, window_bounds = array<i64: 2, 128>}, {transform_indices = @transform_3, window_bounds = array<i64: 16, 128>}]} {
    %c0 = arith.constant 0 : index
    %c0_0 = arith.constant 0 : index
    %0 = vector.load %arg1[%c0, %c0_0] : memref<16x32xf32, #tpu.memory_space<vmem>>, vector<16x32xf32>
    %1 = arith.truncf %0 : vector<16x32xf32> to vector<16x32xbf16>
    %c0_1 = arith.constant 0 : index
    %c0_2 = arith.constant 0 : index
    %2 = vector.load %arg2[%c0_1, %c0_2] : memref<32x128xbf16, #tpu.memory_space<vmem>>, vector<32x128xbf16>
    %cst = arith.constant dense<0.000000e+00> : vector<16x128xf32>
    %3 = tpu.matmul %1, %2, %cst {dimension_numbers = #tpu.dot_dimension_numbers<[1], [0], [0], [1], [0, 0, 1, 1], [], []>} : vector<16x32xbf16>, vector<32x128xbf16>, vector<16x128xf32> -> vector<16x128xf32>
    %cst_3 = arith.constant dense<0.000000e+00> : vector<128xf32>
    %4 = vector.multi_reduction <add>, %3, %cst_3 [0] : vector<16x128xf32> to vector<128xf32>
    %5 = vector.shape_cast %4 : vector<128xf32> to vector<1x128xf32>
    %cst_4 = arith.constant 1.250000e-01 : f32
    %6 = vector.broadcast %cst_4 : f32 to vector<1x128xf32>
    %7 = arith.mulf %5, %6 : vector<1x128xf32>
    %8 = arith.mulf %3, %3 : vector<16x128xf32>
    %cst_5 = arith.constant dense<0.000000e+00> : vector<128xf32>
    %9 = vector.multi_reduction <add>, %8, %cst_5 [0] : vector<16x128xf32> to vector<128xf32>
    %10 = vector.shape_cast %9 : vector<128xf32> to vector<1x128xf32>
    %cst_6 = arith.constant 1.250000e-01 : f32
    %11 = vector.broadcast %cst_6 : f32 to vector<1x128xf32>
    %12 = arith.mulf %10, %11 : vector<1x128xf32>
    %13 = arith.mulf %7, %7 : vector<1x128xf32>
    %14 = arith.subf %12, %13 : vector<1x128xf32>
    %cst_7 = arith.constant 0.000000e+00 : f32
    %15 = vector.broadcast %cst_7 : f32 to vector<1x128xf32>
    %16 = arith.maximumf %14, %15 : vector<1x128xf32>
    %c0_8 = arith.constant 0 : index
    %c0_9 = arith.constant 0 : index
    %17 = vector.load %arg3[%c0_8, %c0_9] : memref<2x128xf32, #tpu.memory_space<vmem>>, vector<1x128xf32>
    %c1 = arith.constant 1 : index
    %c0_10 = arith.constant 0 : index
    %18 = vector.load %arg3[%c1, %c0_10] : memref<2x128xf32, #tpu.memory_space<vmem>>, vector<1x128xf32>
    %cst_11 = arith.constant 9.99999974E-6 : f32
    %19 = vector.broadcast %cst_11 : f32 to vector<1x128xf32>
    %20 = arith.addf %16, %19 : vector<1x128xf32>
    %21 = math.rsqrt %20 : vector<1x128xf32>
    %22 = arith.mulf %17, %21 : vector<1x128xf32>
    %23 = arith.mulf %7, %22 : vector<1x128xf32>
    %24 = arith.subf %18, %23 : vector<1x128xf32>
    %25 = vector.broadcast %22 : vector<1x128xf32> to vector<16x128xf32>
    %26 = arith.mulf %3, %25 : vector<16x128xf32>
    %27 = vector.broadcast %24 : vector<1x128xf32> to vector<16x128xf32>
    %28 = arith.addf %26, %27 : vector<16x128xf32>
    %cst_12 = arith.constant 0.000000e+00 : f32
    %29 = vector.broadcast %cst_12 : f32 to vector<16x128xf32>
    %30 = arith.maximumf %28, %29 : vector<16x128xf32>
    %31 = tpu.iota {dimensions = array<i32: 0>} : vector<16x1xi32>
    %c8_i32 = arith.constant 8 : i32
    %32 = vector.broadcast %c8_i32 : i32 to vector<16x1xi32>
    %33 = arith.cmpi slt, %31, %32 : vector<16x1xi32>
    %cst_13 = arith.constant 0.000000e+00 : f32
    %34 = vector.shape_cast %33 : vector<16x1xi1> to vector<16x1xi1>
    %35 = vector.broadcast %34 : vector<16x1xi1> to vector<16x128xi1>
    %36 = vector.broadcast %cst_13 : f32 to vector<16x128xf32>
    %37 = arith.select %35, %30, %36 : vector<16x128xi1>, vector<16x128xf32>
    %38 = arith.truncf %37 : vector<16x128xf32> to vector<16x128xbf16>
    %c0_14 = arith.constant 0 : index
    %c0_15 = arith.constant 0 : index
    %39 = vector.load %arg4[%c0_14, %c0_15] : memref<16x128xbf16, #tpu.memory_space<vmem>>, vector<16x128xbf16>
    tpu.vector_store %arg4[%c0_14, %c0_15], %38 {strides = array<i32>} : memref<16x128xbf16, #tpu.memory_space<vmem>>, vector<16x128xbf16>,
    return
  }
  func.func @transform_0(%arg0: i32) -> (i32, i32) {
    %c0_i32 = arith.constant 0 : i32
    %c0_i32_0 = arith.constant 0 : i32
    %c0_i32_1 = arith.constant 0 : i32
    return %c0_i32, %c0_i32_0 : i32, i32
  }
  func.func @transform_1(%arg0: i32) -> (i32, i32) {
    %c0_i32 = arith.constant 0 : i32
    %c0_i32_0 = arith.constant 0 : i32
    return %c0_i32, %arg0 : i32, i32
  }
  func.func @transform_2(%arg0: i32) -> (i32, i32) {
    %c0_i32 = arith.constant 0 : i32
    %c0_i32_0 = arith.constant 0 : i32
    return %c0_i32, %arg0 : i32, i32
  }
  func.func @transform_3(%arg0: i32) -> (i32, i32) {
    %c0_i32 = arith.constant 0 : i32
    %c0_i32_0 = arith.constant 0 : i32
    return %c0_i32, %arg0 : i32, i32
  }
}

</mosaic_0001>

<bundles_post_ra>
// kernel: tpu_custom_call.1
= control target key start
LH: loop header
LB: loop body
LE: loop exit
PB: predicated region body
PF: predicated region fallthrough
CT: control target
= control target key end

     0   :  { %s931_s0 = inlined_call_operand.hbm [shape: f32[16,32], index: 0, kind: input, shape index: {}]   ;;  %s932_s1 = inlined_call_operand.hbm [shape: bf16[32,256], index: 1, kind: input, shape index: {}]   ;;  %s933_s2 = inlined_call_operand.hbm [shape: f32[2,256], index: 2, kind: input, shape index: {}]   ;;  %s934_s3 = inlined_call_operand.hbm [shape: bf16[16,256], index: 3, kind: output, shape index: {}]  }
   0x1   :  { %935 = sst [smem:[#allocation12_spill]] %s931_s0 }
   0x2   :  { %8 = vsyncpa [#allocation3], 0 }
   0x3   :  { %9 = vsyncpa [#allocation6], 0 }
   0x4   :  { %11 = vsyncpa [#allocation6 + $0x1], 0 }
   0x5   :  { %12 = vsyncpa [#allocation4], 0 }
   0x6   :  { %14 = vsyncpa [#allocation4 + $0x1], 0  ;;  %s757_s12 = smov 0   ;;  %s759_s13 = smov 0  }
   0x7   :  { %s761_s14 = smov 0   ;;  %s763_s15 = smov 0  }
   0x8 LB: > { %s778_s16 = sadd.s32 1, %s726_s15   ;;  %s48_s17 = sadd.s32 1, %s722_s14  ;;  %s726_s15 = sphi %s763_s15, %s946_s15   ;;  %s722_s14 = sphi %s761_s14, %s945_s14   ;;  %s718_s13 = sphi %s759_s13, %s944_s13   ;;  %s714_s12 = sphi %s757_s12, %s943_s12  }
   0x9   : > { %s45_s18 = ssub.s32 %s726_s15, %s778_s16  ;;  %p55_p0 = scmp.ne.s32.totalorder %s722_s14, %s718_s13 }
   0xa   : > { %p46_p1 = scmp.eq.s32.totalorder %s45_s18, 0  ;;  %p56_p2 = scmp.eq.s32.totalorder %s726_s15, 0 }
   0xb   : > { %p520_p5 = scmp.lt.s32.totalorder %s726_s15, 2  ;;  %s151_s20 = sand.u32 1, %s726_s15  }
   0xc   : > { %s788_s19 = scalar_select %p46_p1, %s722_s14, %s48_s17  }
   0xd   : > { %p57_p4 = por %p56_p2, %p55_p0  ;;  %s153_s21 = sand.u32 1, %s722_s14  }
   0xe   : > { %s465_s22 = sshll.u32 %s153_s21, 4  ;;  %s466_s23 = sshll.u32 %s726_s15, 2 }
   0xf   : > { %s159_s26 = scalar_lea.hbm %s932_s1, %s466_s23  ;;  %s155_s27 = scalar_lea.vmem [#allocation5], %s465_s22 }
  0x10   : > { %s162_s28 = sshll.u32 %s155_s27, 4  ;;  %s160_s29 = sshll.u32 %s159_s26, 4  ;;  %s163_s28 = int_to_ptr.vmem [resolvable:$true] %s162_s28  ;;  %s161_s29 = int_to_ptr.hbm [resolvable:$true] %s160_s29 }
  0x11   : > { %p802_p6 = pnand %p520_p5, %p57_p4  ;;  %s806_s4 = scalar_lea.sflag [#allocation6], %s151_s20 }
  0x12   : > { %s566_s5 = sshra.s32 %s161_s29, 4  ;;  %s573_s9 = scalar_lea.hbm %s932_s1, 32  ;;  %s567_s5 = int_to_ptr.hbm [resolvable:$true] %s566_s5 }
  0x13   : > { %s568_s6 = scalar_lea.hbm %s567_s5, 16  ;;  %p570_p8 = pneg %p802_p6 }
  0x14   : > { %p569_p7 = scmp.ne.s32.totalorder %s567_s5, %s568_s6  ;;  %p574_p11 = scmp.lt.s32.totalorder %s567_s5, %s932_s1 }
  0x15   : > { %p575_p12 = scmp.lt.s32.totalorder %s573_s9, %s568_s6 }
  0x16   : > { %p571_p9 = pnand %p570_p8, %p569_p7 }
  0x17   : > { %p576_p13 = por %p575_p12, %p574_p11 }
  0x18   : > { %p572_p10 = pneg %p571_p9 }
  0x1a   : > { %p577_p1 = pnand %p576_p13, %p572_p10 }
  0x1c   : > { %580 = shalt.err (!%p577_p1)
}
  0x1d   : > { %s728_s17 = smov 128   ;;  %s729_s18 = smov 64  }
  0x1e   : > { %s730_s20 = smov 4   ;;  %s824_s22 = sadd.s32 4294967295, %s726_s15  }
  0x1f   : > { %511 = dma.hbm_to_vmem [thread:$0]  (!%p802_p6), %s161_s29, 256, %s163_s28, %s806_s4, %s728_s17, %s729_s18, %s730_s20  }
  0x20   : > { %s461_s23 = sadd.s32 4294967294, %s726_s15   ;;  %p61_p2 = scmp.ne.s32.totalorder %s718_s13, %s714_s12 }
  0x21   : > { %p62_p4 = scmp.eq.s32.totalorder %s824_s22, 0  ;;  %p111_p5 = scmp.eq.s32.totalorder %s824_s22, 1 }
  0x22   : > { %p117_p7 = scmp.eq.s32.totalorder %s461_s23, 1  ;;  %p462_p9 = scmp.ge.s32.totalorder %s726_s15, 1 }
  0x23   : > { %p834_p10 = por %p62_p4, %p61_p2  ;;  %p841_p11 = por %p111_p5, %p55_p0 }
  0x24   : > { %p845_p12 = por %p117_p7, %p61_p2  ;;  %p124_p13 = scmp.lt.s32.totalorder %s726_s15, 3 }
  0x25   : > { %s940_s0 = sld [smem:[#allocation12_spill]]  ;;  %s731_s6 = smov [#allocation2]  }
  0x26   : > { %p853_p1 = pnand %p462_p9, %p124_p13  ;;  %s137_s7 = sshll.u32 %s731_s6, 4  ;;  %s138_s7 = int_to_ptr.vmem [resolvable:$true] %s137_s7 }
  0x27   : > { %s467_s8 = sshll.u32 %s153_s21, 1  ;;  %s468_s9 = sshll.u32 %s726_s15, 1 }
  0x28   : > { %p504_p0 = pneg %p853_p1  ;;  %s176_s10 = scalar_lea.vmem [#allocation7], %s467_s8 }
  0x29   : > { %s184_s11 = sshll.u32 %s176_s10, 4  ;;  %s180_s23 = scalar_lea.hbm %s933_s2, %s468_s9  ;;  %s185_s11 = int_to_ptr.vmem [resolvable:$true] %s184_s11 }
  0x2a   : > { %p505_p2 = pnand %p504_p0, %p62_p4  ;;  %s732_s27 = smov 8  }
  0x2b   : > { %s135_s29 = sshll.u32 %s940_s0, 4  ;;  %s182_s28 = sshll.u32 %s180_s23, 4  ;;  %s136_s29 = int_to_ptr.hbm [resolvable:$true] %s135_s29  ;;  %s183_s28 = int_to_ptr.hbm [resolvable:$true] %s182_s28 }
  0x2c   : > { %507 = dma.hbm_to_vmem [thread:$0]  (!%p505_p2), %s136_s29, 256, %s138_s7, [#allocation3], %s728_s17, %s728_s17, %s732_s27  }
  0x2d   : > { %s626_s6 = sshra.s32 %s183_s28, 4  ;;  %s633_s10 = scalar_lea.hbm %s933_s2, 4  ;;  %s627_s6 = int_to_ptr.hbm [resolvable:$true] %s626_s6 }
  0x2e   : > { %s628_s0 = scalar_lea.hbm %s627_s6, 2  ;;  %p634_p13 = scmp.lt.s32.totalorder %s627_s6, %s933_s2 }
  0x2f   : > { %p629_p5 = scmp.ne.s32.totalorder %s627_s6, %s628_s0  ;;  %p635_p0 = scmp.lt.s32.totalorder %s633_s10, %s628_s0 }
  0x31   : > { %p631_p7 = pnand %p629_p5, %p570_p8  ;;  %p636_p2 = por %p635_p0, %p634_p13 }
  0x33   : > { %p632_p9 = pneg %p631_p7 }
  0x35   : > { %p637_p3 = pnand %p636_p2, %p632_p9 }
  0x37   : > { %640 = shalt.err (!%p637_p3)
}
  0x38   : > { %514 = dma.hbm_to_vmem [thread:$0]  (!%p802_p6), %s183_s28, 32, %s185_s11, %s806_s4  }
  0x39   : > { %193 = sbr.rel (%p853_p1) target bundleno = 270 (0x10e), region = 32 }
  0x3e   : > { %701 = dma.done.wait (%p62_p4), [#allocation3], 256  }
  0x3f   : > { %703 = vsyncadd (%p62_p4), [#allocation3], 4294967040  ;;  %s200_s0 = sand.u32 1, %s824_s22   ;;  %s889_s17 = sand.u32 1, %s718_s13  }
  0x40   : > { %s471_s29 = sshll.u32 %s889_s17, 4  ;;  %s201_s30 = scalar_lea.sflag [#allocation6], %s200_s0 }
  0x41   : > { %s204_s7 = scalar_lea.vmem [#allocation5], %s471_s29 }
  0x42   : > { %705 = dma.done.wait (%p834_p10), %s201_s30, 288  }
  0x43   : > { %707 = vsyncadd (%p834_p10), %s201_s30, 4294967008  ;;  %v488_v0 = vld [vmem:[%s204_s7 + $0x8] sm:$0xff]  ;;  %v487_v1 = vld [vmem:[%s204_s7] sm:$0xff]  ;;  %vm263_vm0 = vcmask 261120   ;;  %s472_s4 = sshll.u32 %s889_s17, 1  ;;  %s473_s5 = sshll.u32 %s889_s17, 3 }
  0x44   : > { %273 = vmatpush.bf16.msra.mxu0 %v488_v0  ;;  %v244_v2 = vld [vmem:[#allocation2] sm:$0xff]  ;;  %v245_v3 = vld [vmem:[#allocation2 + $0x8] sm:$0xff]  ;;  %s214_s24 = scalar_lea.vmem [#allocation7], %s472_s4  ;;  %s484_s11 = sshll.u32 %s824_s22, 2  ;;  %v733_v45 = vmov 0.0|0.0  }
  0x45   : > { %v246_v4 = vpack.c.bf16 %v245_v3, %v244_v2  ;;  %v302_v34 = vld [vmem:[%s214_s24] sm:$0x1]  ;;  %v303_v38 = vld [vmem:[%s214_s24 + $0x1] sm:$0x1]  ;;  %s352_s27 = scalar_lea.hbm %s934_s3, %s484_s11  ;;  %s242_s28 = scalar_lea.vmem [#allocation8], %s473_s5  ;;  %v491_v46 = vunpack.c.l.bf16 %v733_v45 }
  0x46   : > { %s353_s6 = sshll.u32 %s242_s28, 4  ;;  %s355_s21 = sshll.u32 %s352_s27, 4  ;;  %s354_s6 = int_to_ptr.vmem [resolvable:$true] %s353_s6  ;;  %s356_s21 = int_to_ptr.hbm [resolvable:$true] %s355_s21 }
  0x47   : > { %s342_s22 = scalar_lea.sflag [#allocation4], %s889_s17  ;;  %s670_s8 = sshra.s32 %s356_s21, 4  ;;  %s671_s8 = int_to_ptr.hbm [resolvable:$true] %s670_s8 }
  0x48   : > { %274 = vmatpush.bf16.msra.mxu0 %v487_v1  ;;  %s672_s10 = scalar_lea.hbm %s671_s8, 8  ;;  %s676_s0 = scalar_lea.hbm %s934_s3, 16 }
  0x49   : > { %p673_p3 = scmp.ne.s32.totalorder %s671_s8, %s672_s10  ;;  %p677_p4 = scmp.lt.s32.totalorder %s671_s8, %s934_s3 }
  0x4a   : > { %p678_p10 = scmp.lt.s32.totalorder %s676_s0, %s672_s10 }
  0x4b   : > { %482 = vmatmul.msk.bf16.vlgmr.msra.gmra.mxu0 %vm263_vm0, %v246_v4  ;;  %p674_p6 = pnand %p673_p3, %p841_p11 }
  0x4c   : > { %p679_p1 = por %p678_p10, %p677_p4 }
  0x4d   : > { %p675_p8 = pneg %p674_p6 }
  0x4f   : > { %p680_p5 = pnand %p679_p1, %p675_p8 }
  0xc8   : > { %v276_v5 = vpop.f32.mrf.mxu0 }
  0xc9   : > { %v289_v7 = vmul.f32 %v276_v5, %v276_v5 }
  0xd0   : > { %v278_v6 = vpop.f32.mrf.mxu0 }
  0xd1   : > { %v281_v8 = vadd.f32 %v278_v6, %v276_v5  ;;  %v290_v9 = vmul.f32 %v278_v6, %v278_v6 }
  0xd3   : > { %v282_v10 = vrot.slane %v281_v8, 4  ;;  %v291_v11 = vadd.f32 %v290_v9, %v289_v7 }
  0xd5   : > { %v283_v12 = vadd.f32 %v282_v10, %v281_v8  ;;  %v292_v13 = vrot.slane %v291_v11, 4 }
  0xd7   : > { %v284_v14 = vrot.slane %v283_v12, 2  ;;  %v293_v15 = vadd.f32 %v292_v13, %v291_v11 }
  0xd9   : > { %v285_v16 = vadd.f32 %v284_v14, %v283_v12  ;;  %v294_v17 = vrot.slane %v293_v15, 2 }
  0xdb   : > { %v286_v18 = vrot.slane %v285_v16, 1  ;;  %v295_v19 = vadd.f32 %v294_v17, %v293_v15 }
  0xdd   : > { %v287_v20 = vadd.f32 %v286_v18, %v285_v16  ;;  %v296_v21 = vrot.slane %v295_v19, 1 }
  0xdf   : > { %v288_v22 = vmul.f32 0.125, %v287_v20  ;;  %v297_v23 = vadd.f32 %v296_v21, %v295_v19 }
  0xe1   : > { %v298_v24 = vmul.f32 0.125, %v297_v23  ;;  %v299_v25 = vmul.f32 %v288_v22, %v288_v22 }
  0xe3   : > { %v300_v26 = vsub.f32 %v298_v24, %v299_v25 }
  0xe5   : > { %v301_v27 = vmax.f32 %v300_v26, 0.0 }
  0xe7   : > { %v304_v28 = vadd.f32 1e-05, %v301_v27 }
  0xe9   : > { %564 = vrsqrt.f32 %v304_v28  ;;  %vm311_vm2 = vweird.f32 %v304_v28 }
  0xef   : > { %v565_v29 = vpop.eup %564 }
  0xf0   : > { %v306_v30 = vmul.f32 %v565_v29, %v304_v28  ;;  %vm312_vm1 = vweird.f32 %v565_v29 }
  0xf1   : > { %vm313_vm3 = vmor %vm311_vm2, %vm312_vm1 }
  0xf2   : > { %v307_v31 = vmul.f32 %v565_v29, %v306_v30 }
  0xf4   : > { %v308_v32 = vmul.f32 0.5, %v307_v31 }
  0xf6   : > { %v309_v33 = vsub.f32 1.5, %v308_v32 }
  0xf8   : > { %v310_v35 = vmul.f32 %v565_v29, %v309_v33 }
  0xfa   : > { %v314_v36 = vsel %vm313_vm3, %v565_v29, %v310_v35 }
  0xfb   : > { %v315_v37 = vmul.f32 %v314_v36, %v302_v34 }
  0xfd   : > { %v316_v39 = vmul.f32 %v315_v37, %v288_v22  ;;  %v318_v40 = vperm.slane %v315_v37, 0 }
  0xff   : > { %v317_v41 = vsub.f32 %v303_v38, %v316_v39  ;;  %v319_v42 = vmul.f32 %v318_v40, %v276_v5 }
 0x101   : > { %v321_v43 = vperm.slane %v317_v41, 0 }
 0x103   : > { %v322_v44 = vadd.f32 %v321_v43, %v319_v42 }
 0x105   : > { %v324_v47 = vmax.f32 %v322_v44, 0.0 }
 0x107   : > { %v492_v48 = vpack.c.bf16 %v491_v46, %v324_v47 }
 0x109   : > { %493 = vst [vmem:[%s242_s28] sm:$0xff] %v492_v48  }
 0x10a   : > { %683 = shalt.err (!%p680_p5)
}
 0x10b   : > { %s734_s17 = smov 64   ;;  %s735_s7 = smov 128  }
 0x10c   : > { %s736_s4 = smov 4  }
 0x10d   : > { %502 = dma.vmem_to_hbm [thread:$0]  (%p841_p11), %s354_s6, 128, %s356_s21, %s342_s22, %s734_s17, %s735_s7, %s736_s4  }
 0x10e PF: > { %s370_s24 = sand.u32 1, %s714_s12   ;;  %p942_p7 = scmp.ge.s32.totalorder %s726_s15, 2 }
 0x10f   : > { %s371_s5 = scalar_lea.sflag [#allocation4], %s370_s24 }
 0x110   : > { %p516_p9 = pnand %p942_p7, %p845_p12 }
 0x112   : > { %p517_p13 = pneg %p516_p9 }
 0x114   : > { %709 = dma.done.wait (%p517_p13), %s371_s5, 128  }
 0x115   : > { %711 = vsyncadd (%p517_p13), %s371_s5, 4294967168  ;;  %p17_p0 = scmp.ge.s32.totalorder %s778_s16, 4   ;;  %s943_s12 = smov %s718_s13 }
 0x116   : > { %s944_s13 = smov %s722_s14  ;;  %s945_s14 = smov %s788_s19 }
 0x117   : > { %s946_s15 = smov %s778_s16  ;;  %19 = sbr.rel (!%p17_p0) target bundleno = 8 (0x8), region = 93 }
 0x11c   :  { %377 = vsyncpa [#allocation3], 1 }
 0x11d   :  { %379 = vsyncpa [#allocation3 + $0x1], 1 }
 0x11e   :  { %380 = vsyncpa [#allocation6], 1 }
 0x11f   :  { %382 = vsyncpa [#allocation6 + $0x1], 1 }
 0x120   :  { %383 = vsyncpa [#allocation4], 1 }
 0x121   :  { %385 = vsyncpa [#allocation4 + $0x1], 1 }

</bundles_post_ra>
